<compile_context>
chip_gen: v6e
topology: v6e:2x2x1
jax: 0.10.0
libtpu: 0.0.40
codegen_flags: <defaults>
</compile_context>

<pallas_src>
import jax
import jax.numpy as jnp
from jax.experimental import pallas as pl
from jax.experimental.pallas import tpu as pltpu

_LANE = 128


def _outconv_kernel(x_ref, w_ref, b_ref, o_ref):
    """One (batch, row-tile) block of the 1x1 conv.

    x_ref: (1, C_in,  R_t, 128)  VMEM, dense slabs
    w_ref: (C_out, C_in)         SMEM scalars (resident)
    b_ref: (C_out,)              SMEM scalars (resident)
    o_ref: (1, C_out, R_t, 128)  VMEM, dense slabs
    """
    c_in = x_ref.shape[1]
    c_out = o_ref.shape[1]

    # Iterate over input channels once, FMA-ing each (R_t, 128) slab into the
    # C_out f32 accumulators.  Per-channel VMEM loads bound vreg live ranges.
    x0 = x_ref[0, 0].astype(jnp.float32)                    # (R_t, 128)
    accs = [w_ref[o, 0] * x0 + b_ref[o] for o in range(c_out)]
    for i in range(1, c_in):
        xi = x_ref[0, i].astype(jnp.float32)
        for o in range(c_out):
            accs[o] = accs[o] + w_ref[o, i] * xi

    # Direct per-channel slab stores (no concatenate / sublane packing).
    for o in range(c_out):
        o_ref[0, o] = accs[o].astype(o_ref.dtype)


def _pick_row_tile(n_rows, n_batch, c_in, c_out, itemsize):
    """Pick the row-tile (second-minor block dim) for the (rows, 128) layout.

    Padding-aware and dtype-aware: per-row cost counts double-buffered input
    and output blocks at their real dtype plus the f32 working slabs created
    inside the kernel.
    """
    if n_rows <= 8:
        # Full-extent block (block dim == full array dim satisfies (8,128)).
        return n_rows

    bytes_per_row = _LANE * (
        2 * (c_in + c_out) * itemsize        # double-buffered in + out blocks
        + (c_in + c_out + 2) * 4             # f32 accumulators / temporaries
    )
    budget = 24 * 1024 * 1024                # per-step VMEM budget
    max_rows = max(8, budget // bytes_per_row)
    max_rows = min(max_rows, 2048)           # keep compile/VMEM bounded
    r_tile = min(n_rows, max_rows)
    r_tile = max(8, (r_tile // 8) * 8)       # sublane-aligned

    # v7x has two TensorCores: ensure the parallel grid has >= 2 steps.
    n_tiles = -(-n_rows // r_tile)
    if n_batch * n_tiles < 2 and n_rows >= 16:
        half = -(-n_rows // 2)
        r_tile = max(8, -(-half // 8) * 8)
    return r_tile


def outconv_forward(x_nchw, weight, bias=None):
    """1x1 Conv2d forward (PyTorch semantics).

    x_nchw: (N, C_in, H, W)
    weight: (C_out, C_in, 1, 1)   -- PyTorch Conv2d weight layout
    bias:   (C_out,) or None
    returns (N, C_out, H, W)
    """
    N, C_in, H, W = x_nchw.shape
    C_out = weight.shape[0]
    HW = H * W
    itemsize = jnp.dtype(x_nchw.dtype).itemsize

    w2 = weight.reshape(C_out, C_in).astype(jnp.float32)   # tiny, f32 in SMEM
    if bias is None:
        b1 = jnp.zeros((C_out,), dtype=jnp.float32)
    else:
        b1 = bias.reshape(C_out).astype(jnp.float32)

    # Fold spatial into dense (rows, 128) slabs; pad rows so every tile is
    # full (padded region is computed and discarded — never a VMEM blowup).
    n_rows = -(-HW // _LANE)
    r_tile = _pick_row_tile(n_rows, N, C_in, C_out, itemsize)
    rows_pad = -(-n_rows // r_tile) * r_tile
    hw_pad = rows_pad * _LANE

    x_flat = x_nchw.reshape(N, C_in, HW)
    if hw_pad != HW:
        x_flat = jnp.pad(x_flat, ((0, 0), (0, 0), (0, hw_pad - HW)))
    x4 = x_flat.reshape(N, C_in, rows_pad, _LANE)

    grid = (N, rows_pad // r_tile)

    cost = pl.CostEstimate(
        flops=2 * N * HW * C_in * C_out,
        bytes_accessed=(N * C_in * HW + N * C_out * HW) * itemsize,
        transcendentals=0,
    )

    out4 = pl.pallas_call(
        _outconv_kernel,
        out_shape=jax.ShapeDtypeStruct((N, C_out, rows_pad, _LANE), x_nchw.dtype),
        grid=grid,
        in_specs=[
            # Activations: tiled over (batch, row-tile); (R_tile, 128) dense.
            pl.BlockSpec((1, C_in, r_tile, _LANE), lambda n, t: (n, 0, t, 0)),
            # Weight / bias: whole (tiny) arrays resident in SMEM.
            pl.BlockSpec(memory_space=pltpu.MemorySpace.SMEM),
            pl.BlockSpec(memory_space=pltpu.MemorySpace.SMEM),
        ],
        out_specs=pl.BlockSpec((1, C_out, r_tile, _LANE), lambda n, t: (n, 0, t, 0)),
        compiler_params=pltpu.CompilerParams(
            dimension_semantics=("parallel", "parallel"),
            vmem_limit_bytes=48 * 1024 * 1024,
        ),
        cost_estimate=cost,
    )(x4, w2, b1)

    out = out4.reshape(N, C_out, hw_pad)[:, :, :HW].reshape(N, C_out, H, W)
    return out


if __name__ == "__main__":
    key = jax.random.PRNGKey(0)
    k_x, k_w, k_b = jax.random.split(key, 3)

    # Small shapes consistent with the module: batch=2, C_in=4, C_out=3, 16x16
    N, C_in, C_out, H, W = 2, 4, 3, 16, 16

    x = jax.random.normal(k_x, (N, C_in, H, W), dtype=jnp.float32)
    # Conv2d weight layout: (C_out, C_in, 1, 1)
    weight = jax.random.normal(k_w, (C_out, C_in, 1, 1), dtype=jnp.float32) * 0.1
    bias = jax.random.normal(k_b, (C_out,), dtype=jnp.float32) * 0.1

    out = outconv_forward(x, weight, bias)
    jax.block_until_ready(out)

    # Sanity check against plain-JAX reference of the same 1x1 conv.
    ref = (
        jnp.einsum("nihw,oi->nohw", x, weight.reshape(C_out, C_in))
        + bias.reshape(1, C_out, 1, 1)
    )
    assert out.shape == (N, C_out, H, W)
    assert jnp.allclose(out, ref, atol=1e-5, rtol=1e-5)

    print("KERNEL_OK")
</pallas_src>

<mosaic_0001>
module attributes {stable_mosaic.version = 11 : i64} {
  func.func @_outconv_kernel(%arg0: i32, %arg1: i32, %arg2: memref<1x4x2x128xf32, #tpu.memory_space<vmem>>, %arg3: memref<3x4xf32, #tpu.memory_space<smem>>, %arg4: memref<3xf32, #tpu.memory_space<smem>>, %arg5: memref<1x3x2x128xf32, #tpu.memory_space<vmem>>) attributes {dimension_semantics = [#tpu.dimension_semantics<parallel>, #tpu.dimension_semantics<parallel>], iteration_bounds = array<i64: 2, 1>, scalar_prefetch = 0 : i64, scratch_operands = 0 : i64, tpu.core_type = #tpu.core_type<tc>, window_params = [{transform_indices = @transform_0, window_bounds = array<i64: 1, 4, 2, 128>}, {transform_indices = @transform_1, window_bounds = array<i64: 3, 4>}, {transform_indices = @transform_2, window_bounds = array<i64: 3>}, {transform_indices = @transform_3, window_bounds = array<i64: 1, 3, 2, 128>}]} {
    %c0 = arith.constant 0 : index
    %c0_0 = arith.constant 0 : index
    %c0_1 = arith.constant 0 : index
    %c0_2 = arith.constant 0 : index
    %0 = vector.load %arg2[%c0, %c0_0, %c0_1, %c0_2] : memref<1x4x2x128xf32, #tpu.memory_space<vmem>>, vector<1x1x2x128xf32>
    %1 = vector.shape_cast %0 : vector<1x1x2x128xf32> to vector<2x128xf32>
    %c0_3 = arith.constant 0 : index
    %c0_4 = arith.constant 0 : index
    %2 = memref.load %arg3[%c0_3, %c0_4] : memref<3x4xf32, #tpu.memory_space<smem>>
    %3 = vector.broadcast %2 : f32 to vector<2x128xf32>
    %4 = arith.mulf %3, %1 : vector<2x128xf32>
    %c0_5 = arith.constant 0 : index
    %5 = memref.load %arg4[%c0_5] : memref<3xf32, #tpu.memory_space<smem>>
    %6 = vector.broadcast %5 : f32 to vector<2x128xf32>
    %7 = arith.addf %4, %6 : vector<2x128xf32>
    %c1 = arith.constant 1 : index
    %c0_6 = arith.constant 0 : index
    %8 = memref.load %arg3[%c1, %c0_6] : memref<3x4xf32, #tpu.memory_space<smem>>
    %9 = vector.broadcast %8 : f32 to vector<2x128xf32>
    %10 = arith.mulf %9, %1 : vector<2x128xf32>
    %c1_7 = arith.constant 1 : index
    %11 = memref.load %arg4[%c1_7] : memref<3xf32, #tpu.memory_space<smem>>
    %12 = vector.broadcast %11 : f32 to vector<2x128xf32>
    %13 = arith.addf %10, %12 : vector<2x128xf32>
    %c2 = arith.constant 2 : index
    %c0_8 = arith.constant 0 : index
    %14 = memref.load %arg3[%c2, %c0_8] : memref<3x4xf32, #tpu.memory_space<smem>>
    %15 = vector.broadcast %14 : f32 to vector<2x128xf32>
    %16 = arith.mulf %15, %1 : vector<2x128xf32>
    %c2_9 = arith.constant 2 : index
    %17 = memref.load %arg4[%c2_9] : memref<3xf32, #tpu.memory_space<smem>>
    %18 = vector.broadcast %17 : f32 to vector<2x128xf32>
    %19 = arith.addf %16, %18 : vector<2x128xf32>
    %c0_10 = arith.constant 0 : index
    %c1_11 = arith.constant 1 : index
    %c0_12 = arith.constant 0 : index
    %c0_13 = arith.constant 0 : index
    %20 = vector.load %arg2[%c0_10, %c1_11, %c0_12, %c0_13] : memref<1x4x2x128xf32, #tpu.memory_space<vmem>>, vector<1x1x2x128xf32>
    %21 = vector.shape_cast %20 : vector<1x1x2x128xf32> to vector<2x128xf32>
    %c0_14 = arith.constant 0 : index
    %c1_15 = arith.constant 1 : index
    %22 = memref.load %arg3[%c0_14, %c1_15] : memref<3x4xf32, #tpu.memory_space<smem>>
    %23 = vector.broadcast %22 : f32 to vector<2x128xf32>
    %24 = arith.mulf %23, %21 : vector<2x128xf32>
    %25 = arith.addf %7, %24 : vector<2x128xf32>
    %c1_16 = arith.constant 1 : index
    %c1_17 = arith.constant 1 : index
    %26 = memref.load %arg3[%c1_16, %c1_17] : memref<3x4xf32, #tpu.memory_space<smem>>
    %27 = vector.broadcast %26 : f32 to vector<2x128xf32>
    %28 = arith.mulf %27, %21 : vector<2x128xf32>
    %29 = arith.addf %13, %28 : vector<2x128xf32>
    %c2_18 = arith.constant 2 : index
    %c1_19 = arith.constant 1 : index
    %30 = memref.load %arg3[%c2_18, %c1_19] : memref<3x4xf32, #tpu.memory_space<smem>>
    %31 = vector.broadcast %30 : f32 to vector<2x128xf32>
    %32 = arith.mulf %31, %21 : vector<2x128xf32>
    %33 = arith.addf %19, %32 : vector<2x128xf32>
    %c0_20 = arith.constant 0 : index
    %c2_21 = arith.constant 2 : index
    %c0_22 = arith.constant 0 : index
    %c0_23 = arith.constant 0 : index
    %34 = vector.load %arg2[%c0_20, %c2_21, %c0_22, %c0_23] : memref<1x4x2x128xf32, #tpu.memory_space<vmem>>, vector<1x1x2x128xf32>
    %35 = vector.shape_cast %34 : vector<1x1x2x128xf32> to vector<2x128xf32>
    %c0_24 = arith.constant 0 : index
    %c2_25 = arith.constant 2 : index
    %36 = memref.load %arg3[%c0_24, %c2_25] : memref<3x4xf32, #tpu.memory_space<smem>>
    %37 = vector.broadcast %36 : f32 to vector<2x128xf32>
    %38 = arith.mulf %37, %35 : vector<2x128xf32>
    %39 = arith.addf %25, %38 : vector<2x128xf32>
    %c1_26 = arith.constant 1 : index
    %c2_27 = arith.constant 2 : index
    %40 = memref.load %arg3[%c1_26, %c2_27] : memref<3x4xf32, #tpu.memory_space<smem>>
    %41 = vector.broadcast %40 : f32 to vector<2x128xf32>
    %42 = arith.mulf %41, %35 : vector<2x128xf32>
    %43 = arith.addf %29, %42 : vector<2x128xf32>
    %c2_28 = arith.constant 2 : index
    %c2_29 = arith.constant 2 : index
    %44 = memref.load %arg3[%c2_28, %c2_29] : memref<3x4xf32, #tpu.memory_space<smem>>
    %45 = vector.broadcast %44 : f32 to vector<2x128xf32>
    %46 = arith.mulf %45, %35 : vector<2x128xf32>
    %47 = arith.addf %33, %46 : vector<2x128xf32>
    %c0_30 = arith.constant 0 : index
    %c3 = arith.constant 3 : index
    %c0_31 = arith.constant 0 : index
    %c0_32 = arith.constant 0 : index
    %48 = vector.load %arg2[%c0_30, %c3, %c0_31, %c0_32] : memref<1x4x2x128xf32, #tpu.memory_space<vmem>>, vector<1x1x2x128xf32>
    %49 = vector.shape_cast %48 : vector<1x1x2x128xf32> to vector<2x128xf32>
    %c0_33 = arith.constant 0 : index
    %c3_34 = arith.constant 3 : index
    %50 = memref.load %arg3[%c0_33, %c3_34] : memref<3x4xf32, #tpu.memory_space<smem>>
    %51 = vector.broadcast %50 : f32 to vector<2x128xf32>
    %52 = arith.mulf %51, %49 : vector<2x128xf32>
    %53 = arith.addf %39, %52 : vector<2x128xf32>
    %c1_35 = arith.constant 1 : index
    %c3_36 = arith.constant 3 : index
    %54 = memref.load %arg3[%c1_35, %c3_36] : memref<3x4xf32, #tpu.memory_space<smem>>
    %55 = vector.broadcast %54 : f32 to vector<2x128xf32>
    %56 = arith.mulf %55, %49 : vector<2x128xf32>
    %57 = arith.addf %43, %56 : vector<2x128xf32>
    %c2_37 = arith.constant 2 : index
    %c3_38 = arith.constant 3 : index
    %58 = memref.load %arg3[%c2_37, %c3_38] : memref<3x4xf32, #tpu.memory_space<smem>>
    %59 = vector.broadcast %58 : f32 to vector<2x128xf32>
    %60 = arith.mulf %59, %49 : vector<2x128xf32>
    %61 = arith.addf %47, %60 : vector<2x128xf32>
    %c0_39 = arith.constant 0 : index
    %c0_40 = arith.constant 0 : index
    %c0_41 = arith.constant 0 : index
    %c0_42 = arith.constant 0 : index
    %62 = vector.load %arg5[%c0_39, %c0_40, %c0_41, %c0_42] : memref<1x3x2x128xf32, #tpu.memory_space<vmem>>, vector<1x1x2x128xf32>
    %63 = vector.shape_cast %62 : vector<1x1x2x128xf32> to vector<2x128xf32>
    %64 = vector.shape_cast %53 : vector<2x128xf32> to vector<1x1x2x128xf32>
    tpu.vector_store %arg5[%c0_39, %c0_40, %c0_41, %c0_42], %64 {strides = array<i32>} : memref<1x3x2x128xf32, #tpu.memory_space<vmem>>, vector<1x1x2x128xf32>,
    %c0_43 = arith.constant 0 : index
    %c1_44 = arith.constant 1 : index
    %c0_45 = arith.constant 0 : index
    %c0_46 = arith.constant 0 : index
    %65 = vector.load %arg5[%c0_43, %c1_44, %c0_45, %c0_46] : memref<1x3x2x128xf32, #tpu.memory_space<vmem>>, vector<1x1x2x128xf32>
    %66 = vector.shape_cast %65 : vector<1x1x2x128xf32> to vector<2x128xf32>
    %67 = vector.shape_cast %57 : vector<2x128xf32> to vector<1x1x2x128xf32>
    tpu.vector_store %arg5[%c0_43, %c1_44, %c0_45, %c0_46], %67 {strides = array<i32>} : memref<1x3x2x128xf32, #tpu.memory_space<vmem>>, vector<1x1x2x128xf32>,
    %c0_47 = arith.constant 0 : index
    %c2_48 = arith.constant 2 : index
    %c0_49 = arith.constant 0 : index
    %c0_50 = arith.constant 0 : index
    %68 = vector.load %arg5[%c0_47, %c2_48, %c0_49, %c0_50] : memref<1x3x2x128xf32, #tpu.memory_space<vmem>>, vector<1x1x2x128xf32>
    %69 = vector.shape_cast %68 : vector<1x1x2x128xf32> to vector<2x128xf32>
    %70 = vector.shape_cast %61 : vector<2x128xf32> to vector<1x1x2x128xf32>
    tpu.vector_store %arg5[%c0_47, %c2_48, %c0_49, %c0_50], %70 {strides = array<i32>} : memref<1x3x2x128xf32, #tpu.memory_space<vmem>>, vector<1x1x2x128xf32>,
    return
  }
  func.func @transform_0(%arg0: i32, %arg1: i32) -> (i32, i32, i32, i32) {
    %c0_i32 = arith.constant 0 : i32
    %c0_i32_0 = arith.constant 0 : i32
    %c0_i32_1 = arith.constant 0 : i32
    return %arg0, %c0_i32, %arg1, %c0_i32_0 : i32, i32, i32, i32
  }
  func.func @transform_1(%arg0: i32, %arg1: i32) -> (i32, i32) {
    %c0_i32 = arith.constant 0 : i32
    %c0_i32_0 = arith.constant 0 : i32
    %c0_i32_1 = arith.constant 0 : i32
    return %c0_i32, %c0_i32_0 : i32, i32
  }
  func.func @transform_2(%arg0: i32, %arg1: i32) -> i32 {
    %c0_i32 = arith.constant 0 : i32
    %c0_i32_0 = arith.constant 0 : i32
    return %c0_i32 : i32
  }
  func.func @transform_3(%arg0: i32, %arg1: i32) -> (i32, i32, i32, i32) {
    %c0_i32 = arith.constant 0 : i32
    %c0_i32_0 = arith.constant 0 : i32
    %c0_i32_1 = arith.constant 0 : i32
    return %arg0, %c0_i32, %arg1, %c0_i32_0 : i32, i32, i32, i32
  }
}

</mosaic_0001>

<bundles_post_ra>
// kernel: tpu_custom_call.1
= control target key start
LH: loop header
LB: loop body
LE: loop exit
PB: predicated region body
PF: predicated region fallthrough
CT: control target
= control target key end

     0   :  { %s898_s0 = inlined_call_operand.hbm [shape: f32[2,4,2,128], index: 0, kind: input, shape index: {}]   ;;  %s899_s1 = inlined_call_operand.hbm [shape: f32[3,4], index: 1, kind: input, shape index: {}]   ;;  %s900_s2 = inlined_call_operand.vmem [shape: f32[3], index: 2, kind: input, shape index: {}]   ;;  %s901_s3 = inlined_call_operand.hbm [shape: f32[2,3,2,128], index: 3, kind: output, shape index: {}]  }
   0x1   :  { %903 = sst [smem:[#allocation14_spill]] %s899_s1 }
   0x2   :  { %8 = vsyncpa [#allocation3], 0 }
   0x3   :  { %10 = vsyncpa [#allocation3 + $0x1], 0 }
   0x4   :  { %11 = vsyncpa [#allocation5], 0 }
   0x5   :  { %12 = vsyncpa [#allocation6], 0 }
   0x6   :  { %13 = vsyncpa [#allocation4], 0 }
   0x7   :  { %15 = vsyncpa [#allocation4 + $0x1], 0  ;;  %s717_s12 = smov 0   ;;  %s719_s13 = smov 0  }
   0x8   :  { %s721_s14 = smov 0   ;;  %s723_s15 = smov 0  }
   0x9   :  { %s725_s16 = smov 0   ;;  %s727_s17 = smov 0  }
   0xa LB: > { %s421_s18 = sadd.s32 4294967295, %s687_s17   ;;  %s422_s19 = sadd.s32 4294967294, %s687_s17   ;;  %s687_s17 = sphi %s727_s17, %s21_s17   ;;  %s683_s16 = sphi %s725_s16, %s919_s16   ;;  %s679_s15 = sphi %s723_s15, %s918_s15   ;;  %s675_s14 = sphi %s721_s14, %s917_s14   ;;  %s671_s13 = sphi %s719_s13, %s916_s13   ;;  %s667_s12 = sphi %s717_s12, %s915_s12  }
   0xb   : > { %s42_s20 = sadd.s32 1, %s675_s14  ;;  %p49_p0 = scmp.ne.s32.totalorder %s675_s14, %s671_s13 }
   0xc   : > { %p50_p1 = scmp.eq.s32.totalorder %s687_s17, 0  ;;  %p55_p2 = scmp.ne.s32.totalorder %s671_s13, %s667_s12 }
   0xd   : > { %p755_p3 = scmp.eq.s32.totalorder %s421_s18, 0  ;;  %p123_p4 = scmp.eq.s32.totalorder %s421_s18, 1 }
   0xe   : > { %p51_p5 = por %p50_p1, %p49_p0  ;;  %p129_p6 = scmp.eq.s32.totalorder %s422_s19, 1 }
   0xf   : > { %p761_p7 = por %p755_p3, %p55_p2  ;;  %p765_p8 = por %p123_p4, %p49_p0 }
  0x10   : > { %p769_p9 = por %p129_p6, %p55_p2  ;;  %p423_p10 = scmp.ge.s32.totalorder %s687_s17, 1 }
  0x11   : > { %s906_s23 = scalar_select %p765_p8, 1, 0 }
  0x12   : > { %s907_s24 = scalar_select %p769_p9, 1, 0 }
  0x13   : > { %p136_p11 = scmp.lt.s32.totalorder %s687_s17, 3  ;;  %p487_p1 = scmp.lt.s32.totalorder %s687_s17, 2 }
  0x14   : > { %s158_s28 = sshll.u32 %s900_s2, 4  ;;  %s169_s4 = sand.u32 1, %s675_s14   ;;  %s159_s28 = int_to_ptr.vmem [resolvable:$true] %s158_s28 }
  0x15   : > { %p776_p13 = pnand %p423_p10, %p136_p11  ;;  %p786_p4 = pnand %p487_p1, %p51_p5 }
  0x16   : > { %s33_s5 = sadd.s32 1, %s683_s16  ;;  %s689_s6 = smov [#allocation7]  }
  0x17   : > { %p470_p0 = pneg %p776_p13  ;;  %s911_s1 = sld [smem:[#allocation14_spill]] }
  0x18   : > { %s556_s9 = scalar_lea.vmem %s159_s28, 16  ;;  %p564_p1 = scmp.lt.s32.totalorder %s159_s28, %s159_s28 }
  0x19   : > { %p792_p2 = pnand %p470_p0, %p755_p3  ;;  %p557_p5 = scmp.ne.s32.totalorder %s159_s28, %s556_s9 }
  0x1a   : > { %p565_p0 = scmp.lt.s32.totalorder %s556_s9, %s556_s9 }
  0x1b   : > { %p558_p6 = pneg %p792_p2 }
  0x1c   : > { %p566_p12 = por %p565_p0, %p564_p1 }
  0x1d   : > { %473 = dma.hbm_to_smem (!%p792_p2), %s911_s1, 64, %s689_s6, [#allocation5]  }
  0x1e   : > { %p559_p10 = pnand %p558_p6, %p557_p5 }
  0x20   : > { %p560_p11 = pneg %p559_p10 }
  0x22   : > { %p567_p9 = pnand %p566_p12, %p560_p11 }
  0x24   : > { %570 = shalt.err (!%p567_p9)
}
  0x25   : > { %s690_s10 = smov [#allocation8]   ;;  %p35_p8 = scmp.ge.s32.totalorder %s33_s5, 2 }
  0x26   : > { %476 = dma.vmem_to_smem (!%p792_p2), %s159_s28, 16, %s690_s10, [#allocation6]  }
  0x27   : > { %s427_s11 = sshll.u32 %s169_s4, 3  ;;  %s455_s18 = sshll.u32 %s683_s16, 7 }
  0x28   : > { %s921_s5 = smov (%p35_p8, %s33_s5), 0  ;;  %s180_s27 = scalar_lea.hbm %s898_s0, %s455_s18 }
  0x29   : > { %s37_s6 = ssub.s32 %s683_s16, %s921_s5  ;;  %s173_s7 = scalar_lea.vmem [#allocation2], %s427_s11 }
  0x2a   : > { %s181_s8 = sshll.u32 %s173_s7, 4  ;;  %p40_p9 = scmp.eq.s32.totalorder %s37_s6, 0  ;;  %s182_s8 = int_to_ptr.vmem [resolvable:$true] %s181_s8 }
  0x2b   : > { %s170_s9 = scalar_lea.sflag [#allocation3], %s169_s4  ;;  %p573_p12 = pneg %p786_p4 }
  0x2c   : > { %s818_s30 = scalar_select %p40_p9, %s675_s14, %s42_s20  }
  0x2d   : > { %s584_s28 = scalar_lea.vmem %s182_s8, 128  ;;  %s691_s10 = smov [#allocation2]  }
  0x2e   : > { %p585_p2 = scmp.ne.s32.totalorder %s182_s8, %s584_s28  ;;  %s589_s1 = sshll.u32 %s691_s10, 4  ;;  %s590_s1 = int_to_ptr.vmem [resolvable:$false] %s589_s1 }
  0x2f   : > { %s591_s19 = scalar_lea.vmem %s590_s1, 256  ;;  %p592_p6 = scmp.lt.s32.totalorder %s182_s8, %s590_s1 }
  0x30   : > { %p587_p8 = pnand %p585_p2, %p573_p12  ;;  %p593_p10 = scmp.lt.s32.totalorder %s591_s19, %s584_s28 }
  0x32   : > { %p588_p5 = pneg %p587_p8  ;;  %p594_p11 = por %p593_p10, %p592_p6 }
  0x34   : > { %p595_p1 = pnand %p594_p11, %p588_p5 }
  0x36   : > { %598 = shalt.err (!%p595_p1)
}
  0x37   : > { %s692_s11 = smov 32   ;;  %s693_s20 = smov 2  }
  0x38   : > { %480 = dma.hbm_to_vmem [thread:$0]  (!%p786_p4), %s180_s27, 128, %s182_s8, %s170_s9, %s692_s11, %s692_s11, %s693_s20  }
  0x39   : > { %193 = sbr.rel (%p776_p13) target bundleno = 110 (0x6e), region = 32  ;;  %s827_s4 = sand.u32 (!%p776_p13), 1, %s671_s13  }
  0x3a   : > { %s431_s18 = sshll.u32 (!%p776_p13), %s827_s4, 3  ;;  %s196_s1 = scalar_lea.sflag (!%p776_p13), [#allocation3], %s827_s4 }
  0x3b   : > { %s199_s26 = scalar_lea.vmem (!%p776_p13), [#allocation2], %s431_s18 }
  0x3e   : > { %650 = dma.done.wait (%p761_p7), %s196_s1, 128  }
  0x3f   : > { %652 = vsyncadd (%p761_p7), %s196_s1, 4294967168 }
  0x40   : > { %654 = dma.done.wait (%p755_p3), [#allocation5], 64  }
  0x41   : > { %656 = vsyncadd (%p755_p3), [#allocation5], 4294967232 }
  0x42   : > { %658 = dma.done.wait (%p755_p3), [#allocation6], 16  }
  0x43   : > { %660 = vsyncadd (%p755_p3), [#allocation6], 4294967280 }
  0x44   : > { %212 = sfence }
  0x45   : > { %s232_s25 = sld [smem:[#allocation7]]  ;;  %v231_v0 = vld [vmem:[%s199_s26] sm:$0x3]  ;;  %v438_v2 = vld [vmem:[%s199_s26 + $0x2] sm:$0x3]  ;;  %s456_s10 = smul.u32 6, %s827_s4 }
  0x46   : > { %s235_s29 = sld [smem:[#allocation8]]  ;;  %v442_v5 = vld [vmem:[%s199_s26 + $0x4] sm:$0x3]  ;;  %v446_v7 = vld [vmem:[%s199_s26 + $0x6] sm:$0x3]  ;;  %p912_p7 = scmp.ne.s32.totalorder %s906_s23, 0 }
  0x47   : > { %s439_s27 = sld [smem:[#allocation7 + $0x1]]  ;;  %s230_s26 = scalar_lea.vmem [#allocation9], %s456_s10 }
  0x48   : > { %s443_s6 = sld [smem:[#allocation7 + $0x2]] }
  0x49   : > { %s447_s22 = sld [smem:[#allocation7 + $0x3]] }
  0x4a   : > { %s434_s7 = sld [smem:[#allocation7 + $0x80]] }
  0x4b   : > { %v233_v1 = vstv %s232_s25  ;;  %s435_s8 = sld [smem:[#allocation8 + $0x1]]  ;;  %s312_s25 = sshll.u32 %s230_s26, 4  ;;  %s845_s25 = int_to_ptr.vmem [resolvable:$true] %s312_s25 }
  0x4c   : > { %v234_v3 = vmul.f32 %v233_v1, %v231_v0  ;;  %v236_v4 = vstv %s235_s29  ;;  %s440_s9 = sld [smem:[#allocation7 + $0x81]]  ;;  %s457_s29 = smul.u32 96, %s679_s15 }
  0x4d   : > { %v253_v6 = vstv %s439_s27  ;;  %s444_s21 = sld [smem:[#allocation7 + $0x82]]  ;;  %s694_s15 = smov [#allocation9]  }
  0x4e   : > { %v237_v8 = vadd.f32 %v236_v4, %v234_v3  ;;  %v254_v9 = vmul.f32 %v438_v2, %v253_v6  ;;  %v267_v10 = vstv %s443_s6  ;;  %s448_s28 = sld [smem:[#allocation7 + $0x83]] }
  0x4f   : > { %v268_v11 = vmul.f32 %v442_v5, %v267_v10  ;;  %v281_v12 = vstv %s447_s22  ;;  %s436_s19 = sld [smem:[#allocation7 + $0x100]]  ;;  %s850_s22 = scalar_lea.hbm %s901_s3, %s457_s29 }
  0x50   : > { %v255_v13 = vadd.f32 %v254_v9, %v237_v8  ;;  %v282_v14 = vmul.f32 %v446_v7, %v281_v12  ;;  %v239_v15 = vstv %s434_s7  ;;  %s437_s11 = sld [smem:[#allocation8 + $0x2]]  ;;  %s298_s7 = scalar_lea.sflag [#allocation4], %s827_s4 }
  0x51   : > { %v240_v16 = vmul.f32 %v239_v15, %v231_v0  ;;  %v242_v17 = vstv %s435_s8  ;;  %s441_s20 = sld [smem:[#allocation7 + $0x101]]  ;;  %s599_s8 = scalar_lea.vmem %s845_s25, 96 }
  0x52   : > { %v269_v18 = vadd.f32 %v268_v11, %v255_v13  ;;  %v257_v19 = vstv %s440_s9  ;;  %s445_s18 = sld [smem:[#allocation7 + $0x102]]  ;;  %p600_p3 = scmp.ne.s32.totalorder %s845_s25, %s599_s8 }
  0x53   : > { %v243_v20 = vadd.f32 %v242_v17, %v240_v16  ;;  %v258_v21 = vmul.f32 %v438_v2, %v257_v19  ;;  %v271_v22 = vstv %s444_s21  ;;  %s449_s1 = sld [smem:[#allocation7 + $0x103]]  ;;  %s603_s9 = sshll.u32 %s694_s15, 4  ;;  %s604_s9 = int_to_ptr.vmem [resolvable:$false] %s603_s9 }
  0x54   : > { %v283_v23 = vadd.f32 %v282_v14, %v269_v18  ;;  %v272_v24 = vmul.f32 %v442_v5, %v271_v22  ;;  %v285_v25 = vstv %s448_s28  ;;  %p601_p13 = pnand %p600_p3, %p912_p7  ;;  %s605_s21 = scalar_lea.vmem %s604_s9, 192 }
  0x55   : > { %v259_v26 = vadd.f32 %v258_v21, %v243_v20  ;;  %v286_v27 = vmul.f32 %v446_v7, %v285_v25  ;;  %v245_v28 = vstv %s436_s19  ;;  %p606_p0 = scmp.lt.s32.totalorder %s845_s25, %s604_s9  ;;  %p607_p9 = scmp.lt.s32.totalorder %s605_s21, %s599_s8 }
  0x56   : > { %292 = vst [vmem:[%s230_s26] sm:$0x3] %v283_v23  ;;  %v246_v29 = vmul.f32 %v245_v28, %v231_v0  ;;  %v248_v30 = vstv %s437_s11  ;;  %p602_p4 = pneg %p601_p13 }
  0x57   : > { %v273_v31 = vadd.f32 %v272_v24, %v259_v26  ;;  %v261_v32 = vstv %s441_s20  ;;  %p608_p12 = por %p607_p9, %p606_p0 }
  0x58   : > { %v249_v33 = vadd.f32 %v248_v30, %v246_v29  ;;  %v262_v34 = vmul.f32 %v438_v2, %v261_v32  ;;  %v275_v35 = vstv %s445_s18 }
  0x59   : > { %v287_v36 = vadd.f32 %v286_v27, %v273_v31  ;;  %v276_v37 = vmul.f32 %v442_v5, %v275_v35  ;;  %v289_v38 = vstv %s449_s1  ;;  %p609_p2 = pnand %p608_p12, %p602_p4 }
  0x5a   : > { %v263_v39 = vadd.f32 %v262_v34, %v249_v33  ;;  %v290_v40 = vmul.f32 %v446_v7, %v289_v38 }
  0x5b   : > { %450 = vst [vmem:[%s230_s26 + $0x2] sm:$0x3] %v287_v36 }
  0x5c   : > { %v277_v41 = vadd.f32 %v276_v37, %v263_v39 }
  0x5e   : > { %v291_v42 = vadd.f32 %v290_v40, %v277_v41 }
  0x60   : > { %451 = vst [vmem:[%s230_s26 + $0x4] sm:$0x3] %v291_v42 }
  0x61   : > { %612 = shalt.err (!%p609_p2)
}
  0x62   : > { %s613_s28 = scalar_lea.hbm %s850_s22, 96  ;;  %s617_s11 = scalar_lea.hbm %s901_s3, 192 }
  0x63   : > { %p614_p8 = scmp.ne.s32.totalorder %s850_s22, %s613_s28  ;;  %p618_p10 = scmp.lt.s32.totalorder %s850_s22, %s901_s3 }
  0x64   : > { %p619_p11 = scmp.lt.s32.totalorder %s617_s11, %s613_s28 }
  0x65   : > { %p615_p5 = pnand %p614_p8, %p912_p7 }
  0x66   : > { %p620_p1 = por %p619_p11, %p618_p10 }
  0x67   : > { %p616_p6 = pneg %p615_p5 }
  0x69   : > { %p621_p3 = pnand %p620_p1, %p616_p6 }
  0x6b   : > { %624 = shalt.err (!%p621_p3)
}
  0x6c   : > { %s695_s1 = smov 32   ;;  %s696_s26 = smov 2  }
  0x6d   : > { %468 = dma.vmem_to_hbm [thread:$0]  (%p912_p7), %s845_s25, 96, %s850_s22, %s298_s7, %s695_s1, %s695_s1, %s696_s26  }
  0x6e PF: > { %s327_s29 = sand.u32 1, %s667_s12   ;;  %p913_p13 = scmp.ne.s32.totalorder %s907_s24, 0 }
  0x6f   : > { %p914_p4 = scmp.ge.s32.totalorder %s687_s17, 2  ;;  %s328_s27 = scalar_lea.sflag [#allocation4], %s327_s29 }
  0x71   : > { %p482_p0 = pnand %p914_p4, %p913_p13 }
  0x73   : > { %p483_p9 = pneg %p482_p0 }
  0x75   : > { %662 = dma.done.wait (%p483_p9), %s328_s27, 96  }
  0x76   : > { %664 = vsyncadd (%p483_p9), %s328_s27, 4294967200  ;;  %s21_s17 = sadd.s32 1, %s687_s17   ;;  %s915_s12 = smov %s671_s13 }
  0x77   : > { %p18_p12 = scmp.ge.s32.totalorder %s21_s17, 4   ;;  %s916_s13 = smov %s675_s14 }
  0x78   : > { %s917_s14 = smov %s818_s30  ;;  %s918_s15 = smov %s683_s16 }
  0x79   : > { %s919_s16 = smov %s921_s5  ;;  %20 = sbr.rel (!%p18_p12) target bundleno = 10 (0xa), region = 92 }
  0x7e   :  { %333 = vsyncpa [#allocation3], 1 }
  0x7f   :  { %335 = vsyncpa [#allocation3 + $0x1], 1 }
  0x80   :  { %336 = vsyncpa [#allocation4], 1 }
  0x81   :  { %338 = vsyncpa [#allocation4 + $0x1], 1 }
  0x82   :  { %339 = vsyncpa [#allocation5], 1 }
  0x83   :  { %341 = vsyncpa [#allocation5 + $0x1], 1 }
  0x84   :  { %342 = vsyncpa [#allocation6], 1 }
  0x85   :  { %344 = vsyncpa [#allocation6 + $0x1], 1 }

</bundles_post_ra>
